<compile_context>
chip_gen: v5e
topology: v5e:2x2
jax: 0.10.0
libtpu: 0.0.40
codegen_flags: <defaults>
</compile_context>

<pallas_src>
import jax
import jax.numpy as jnp
from jax.experimental import pallas as pl
from jax.experimental.pallas import tpu as pltpu


def attention_unit_kernel(x_ref, s_ref, wx_ref, bx_ref, ws_ref, bs_ref,
                          ww_ref, bw_ref, out_ref):
    # x_ref : (Bb, T, xDim)   block of batch elements (full T, full xDim)
    # s_ref : (Bb, sDim)      previous state for this batch block
    # wx_ref: (xDim, attDim), bx_ref: (1, attDim)
    # ws_ref: (sDim, attDim), bs_ref: (1, attDim)
    # ww_ref: (1, attDim)     wEmbed weight stored as a lane-dense row
    # bw_ref: (1, 1)
    # out_ref: (Bb, T)        lane-dense attention weights
    Bb, T, xDim = x_ref.shape
    attDim = wx_ref.shape[1]

    # xProj = x @ Wx + bx over all Bb*T rows at once (one big MXU matmul).
    x2d = x_ref[...].reshape(Bb * T, xDim)
    x_proj = jnp.dot(x2d, wx_ref[...], preferred_element_type=jnp.float32)
    x_proj = (x_proj + bx_ref[...]).reshape(Bb, T, attDim)

    # sProj = sPrev @ Ws + bs, broadcast over T.
    s_proj = jnp.dot(s_ref[...], ws_ref[...], preferred_element_type=jnp.float32)
    s_proj = s_proj + bs_ref[...]                          # (Bb, attDim)

    tanh_sum = jnp.tanh(x_proj + s_proj[:, None, :])       # (Bb, T, attDim)

    # e = tanh_sum . ww + bw : VPU multiply + lane reduce (avoid a
    # lane-width-1 MXU matmul); result lands lane-dense as (Bb, T).
    w_row = ww_ref[...].reshape(1, 1, attDim)
    e = jnp.sum(tanh_sum * w_row, axis=-1) + bw_ref[...]   # (Bb, T)

    # Softmax over T (last / lane axis).  Adding bw before softmax is a
    # shift-invariant no-op but mirrors the PyTorch module exactly.
    m = jnp.max(e, axis=-1, keepdims=True)
    ex = jnp.exp(e - m)
    denom = jnp.sum(ex, axis=-1, keepdims=True)
    alpha = ex * pl.reciprocal(denom, approx=True)

    out_ref[...] = alpha.astype(out_ref.dtype)


def attention_unit(x, s_prev, params, *, rows_per_block=512,
                   use_bf16_matmul=False):
    """x: [B, T, xDim]; s_prev: [1, B, sDim] -> alpha [B, T] (softmax over T)."""
    B, T, xDim = x.shape
    sDim = s_prev.shape[-1]
    attDim = params["wx"].shape[1]

    s2d = s_prev[0]                                    # (B, sDim)
    ww_row = params["ww"].reshape(1, attDim)           # (attDim,1) -> (1,attDim)

    wx, ws = params["wx"], params["ws"]
    if use_bf16_matmul:                                # v6e / v7x fast path
        x = x.astype(jnp.bfloat16)
        s2d = s2d.astype(jnp.bfloat16)
        wx = wx.astype(jnp.bfloat16)
        ws = ws.astype(jnp.bfloat16)

    # Batch-block size: target ~rows_per_block rows in the main matmul.  When
    # blocking (b_blk < B) keep b_blk a multiple of 8 so the (b_blk, T) output
    # block satisfies the (8, 128) sublane constraint.
    b_fit = max(1, rows_per_block // max(T, 1))
    if b_fit >= B:
        b_blk = B
    else:
        b_blk = max(8, (b_fit // 8) * 8)
    n_blk = pl.cdiv(B, b_blk)
    B_pad = n_blk * b_blk
    if B_pad != B:
        # Padded batch rows are dropped after the call; softmax is over the
        # (unpadded) T axis, so no masking is needed.
        x = jnp.pad(x, ((0, B_pad - B), (0, 0), (0, 0)))
        s2d = jnp.pad(s2d, ((0, B_pad - B), (0, 0)))

    cost = pl.CostEstimate(
        flops=(2 * B_pad * T * xDim * attDim
               + 2 * B_pad * sDim * attDim
               + 2 * B_pad * T * attDim),
        transcendentals=B_pad * T * attDim + B_pad * T + B_pad,
        bytes_accessed=4 * (B_pad * T * xDim + B_pad * sDim
                            + xDim * attDim + sDim * attDim
                            + 2 * attDim + 2 + B_pad * T),
    )

    out = pl.pallas_call(
        attention_unit_kernel,
        out_shape=jax.ShapeDtypeStruct((B_pad, T), jnp.float32),
        grid_spec=pltpu.PrefetchScalarGridSpec(
            num_scalar_prefetch=0,
            grid=(n_blk,),
            in_specs=[
                pl.BlockSpec((b_blk, T, xDim), lambda b: (b, 0, 0)),  # x
                pl.BlockSpec((b_blk, sDim), lambda b: (b, 0)),        # sPrev
                pl.BlockSpec((xDim, attDim), lambda b: (0, 0)),       # Wx
                pl.BlockSpec((1, attDim), lambda b: (0, 0)),          # bx
                pl.BlockSpec((sDim, attDim), lambda b: (0, 0)),       # Ws
                pl.BlockSpec((1, attDim), lambda b: (0, 0)),          # bs
                pl.BlockSpec((1, attDim), lambda b: (0, 0)),          # ww row
                pl.BlockSpec((1, 1), lambda b: (0, 0)),               # bw
            ],
            out_specs=pl.BlockSpec((b_blk, T), lambda b: (b, 0)),
        ),
        compiler_params=pltpu.CompilerParams(
            dimension_semantics=("parallel",)),
        cost_estimate=cost,
    )(x, s2d, wx, params["bx"], ws, params["bs"], ww_row, params["bw"])
    return out[:B]


def attention_unit_ref(x, s_prev, params):
    """Pure-JAX reference mirroring the PyTorch forward."""
    B, T, xDim = x.shape
    x_proj = x.reshape(-1, xDim) @ params["wx"] + params["bx"]       # (B*T, att)
    x_proj = x_proj.reshape(B, T, -1)
    s_proj = s_prev[0] @ params["ws"] + params["bs"]                 # (B, att)
    tanh_sum = jnp.tanh(x_proj + s_proj[:, None, :])
    e = tanh_sum.reshape(-1, tanh_sum.shape[-1]) @ params["ww"] + params["bw"]
    e = e.reshape(B, T)
    return jax.nn.softmax(e, axis=1)


def init_params(key, sDim, xDim, attDim):
    k1, k2, k3, k4, k5, k6 = jax.random.split(key, 6)
    scale = 0.1
    return {
        "wx": scale * jax.random.normal(k1, (xDim, attDim), jnp.float32),
        "bx": scale * jax.random.normal(k2, (1, attDim), jnp.float32),
        "ws": scale * jax.random.normal(k3, (sDim, attDim), jnp.float32),
        "bs": scale * jax.random.normal(k4, (1, attDim), jnp.float32),
        "ww": scale * jax.random.normal(k5, (attDim, 1), jnp.float32),
        "bw": scale * jax.random.normal(k6, (1, 1), jnp.float32),
    }


if __name__ == "__main__":
    B, T = 2, 8
    sDim, xDim, attDim = 32, 32, 32

    key = jax.random.PRNGKey(0)
    kx, ks, kp = jax.random.split(key, 3)
    x = jax.random.normal(kx, (B, T, xDim), jnp.float32)
    s_prev = jax.random.normal(ks, (1, B, sDim), jnp.float32)
    params = init_params(kp, sDim, xDim, attDim)

    alpha = attention_unit(x, s_prev, params)
    alpha = jax.block_until_ready(alpha)

    alpha_ref = attention_unit_ref(x, s_prev, params)
    assert alpha.shape == (B, T)
    # approx=True reciprocal in the softmax -> compare with a modest tolerance.
    assert jnp.allclose(alpha, alpha_ref, atol=5e-3, rtol=5e-3), (
        "mismatch vs reference")
    assert jnp.allclose(jnp.sum(alpha, axis=1), 1.0, atol=1e-2)

    print("KERNEL_OK")
</pallas_src>

<mosaic_0001>
module attributes {stable_mosaic.version = 11 : i64} {
  func.func @attention_unit_kernel(%arg0: i32, %arg1: memref<2x8x32xf32, #tpu.memory_space<vmem>>, %arg2: memref<2x32xf32, #tpu.memory_space<vmem>>, %arg3: memref<32x32xf32, #tpu.memory_space<vmem>>, %arg4: memref<1x32xf32, #tpu.memory_space<vmem>>, %arg5: memref<32x32xf32, #tpu.memory_space<vmem>>, %arg6: memref<1x32xf32, #tpu.memory_space<vmem>>, %arg7: memref<1x32xf32, #tpu.memory_space<vmem>>, %arg8: memref<1x1xf32, #tpu.memory_space<vmem>>, %arg9: memref<2x8xf32, #tpu.memory_space<vmem>>) attributes {dimension_semantics = [#tpu.dimension_semantics<parallel>], iteration_bounds = array<i64: 1>, scalar_prefetch = 0 : i64, scratch_operands = 0 : i64, tpu.core_type = #tpu.core_type<tc>, window_params = [{transform_indices = @transform_0, window_bounds = array<i64: 2, 8, 32>}, {transform_indices = @transform_1, window_bounds = array<i64: 2, 32>}, {pipeline_mode = #tpu.pipeline_mode<synchronous>, transform_indices = @transform_2, window_bounds = array<i64: 32, 32>}, {pipeline_mode = #tpu.pipeline_mode<synchronous>, transform_indices = @transform_3, window_bounds = array<i64: 1, 32>}, {pipeline_mode = #tpu.pipeline_mode<synchronous>, transform_indices = @transform_4, window_bounds = array<i64: 32, 32>}, {pipeline_mode = #tpu.pipeline_mode<synchronous>, transform_indices = @transform_5, window_bounds = array<i64: 1, 32>}, {pipeline_mode = #tpu.pipeline_mode<synchronous>, transform_indices = @transform_6, window_bounds = array<i64: 1, 32>}, {pipeline_mode = #tpu.pipeline_mode<synchronous>, transform_indices = @transform_7, window_bounds = array<i64: 1, 1>}, {transform_indices = @transform_8, window_bounds = array<i64: 2, 8>}]} {
    %c0 = arith.constant 0 : index
    %c0_0 = arith.constant 0 : index
    %c0_1 = arith.constant 0 : index
    %0 = vector.load %arg1[%c0, %c0_0, %c0_1] : memref<2x8x32xf32, #tpu.memory_space<vmem>>, vector<2x8x32xf32>
    %1 = vector.shape_cast %0 : vector<2x8x32xf32> to vector<16x32xf32>
    %c0_2 = arith.constant 0 : index
    %c0_3 = arith.constant 0 : index
    %2 = vector.load %arg3[%c0_2, %c0_3] : memref<32x32xf32, #tpu.memory_space<vmem>>, vector<32x32xf32>
    %cst = arith.constant dense<0.000000e+00> : vector<16x32xf32>
    %3 = tpu.matmul %1, %2, %cst {dimension_numbers = #tpu.dot_dimension_numbers<[1], [0], [0], [1], [0, 0, 1, 1], [], []>} : vector<16x32xf32>, vector<32x32xf32>, vector<16x32xf32> -> vector<16x32xf32>
    %c0_4 = arith.constant 0 : index
    %c0_5 = arith.constant 0 : index
    %4 = vector.load %arg4[%c0_4, %c0_5] : memref<1x32xf32, #tpu.memory_space<vmem>>, vector<1x32xf32>
    %5 = vector.broadcast %4 : vector<1x32xf32> to vector<16x32xf32>
    %6 = arith.addf %3, %5 : vector<16x32xf32>
    %7 = vector.shape_cast %6 : vector<16x32xf32> to vector<2x8x32xf32>
    %c0_6 = arith.constant 0 : index
    %c0_7 = arith.constant 0 : index
    %8 = vector.load %arg2[%c0_6, %c0_7] : memref<2x32xf32, #tpu.memory_space<vmem>>, vector<2x32xf32>
    %c0_8 = arith.constant 0 : index
    %c0_9 = arith.constant 0 : index
    %9 = vector.load %arg5[%c0_8, %c0_9] : memref<32x32xf32, #tpu.memory_space<vmem>>, vector<32x32xf32>
    %cst_10 = arith.constant dense<0.000000e+00> : vector<2x32xf32>
    %10 = tpu.matmul %8, %9, %cst_10 {dimension_numbers = #tpu.dot_dimension_numbers<[1], [0], [0], [1], [0, 0, 1, 1], [], []>} : vector<2x32xf32>, vector<32x32xf32>, vector<2x32xf32> -> vector<2x32xf32>
    %c0_11 = arith.constant 0 : index
    %c0_12 = arith.constant 0 : index
    %11 = vector.load %arg6[%c0_11, %c0_12] : memref<1x32xf32, #tpu.memory_space<vmem>>, vector<1x32xf32>
    %12 = vector.broadcast %11 : vector<1x32xf32> to vector<2x32xf32>
    %13 = arith.addf %10, %12 : vector<2x32xf32>
    %14 = vector.shape_cast %13 : vector<2x32xf32> to vector<2x1x32xf32>
    %15 = vector.broadcast %14 : vector<2x1x32xf32> to vector<2x8x32xf32>
    %16 = arith.addf %7, %15 : vector<2x8x32xf32>
    %17 = math.tanh %16 : vector<2x8x32xf32>
    %c0_13 = arith.constant 0 : index
    %c0_14 = arith.constant 0 : index
    %18 = vector.load %arg7[%c0_13, %c0_14] : memref<1x32xf32, #tpu.memory_space<vmem>>, vector<1x32xf32>
    %19 = vector.shape_cast %18 : vector<1x32xf32> to vector<1x1x32xf32>
    %20 = vector.broadcast %19 : vector<1x1x32xf32> to vector<2x8x32xf32>
    %21 = arith.mulf %17, %20 : vector<2x8x32xf32>
    %cst_15 = arith.constant dense<0.000000e+00> : vector<2x8xf32>
    %22 = vector.multi_reduction <add>, %21, %cst_15 [2] : vector<2x8x32xf32> to vector<2x8xf32>
    %c0_16 = arith.constant 0 : index
    %c0_17 = arith.constant 0 : index
    %23 = vector.load %arg8[%c0_16, %c0_17] : memref<1x1xf32, #tpu.memory_space<vmem>>, vector<1x1xf32>
    %24 = vector.broadcast %23 : vector<1x1xf32> to vector<2x8xf32>
    %25 = arith.addf %22, %24 : vector<2x8xf32>
    %cst_18 = arith.constant dense<0xFF800000> : vector<2xf32>
    %26 = vector.multi_reduction <maximumf>, %25, %cst_18 [1] : vector<2x8xf32> to vector<2xf32>
    %27 = vector.shape_cast %26 : vector<2xf32> to vector<2x1xf32>
    %28 = vector.broadcast %27 : vector<2x1xf32> to vector<2x8xf32>
    %29 = arith.subf %25, %28 : vector<2x8xf32>
    %30 = math.exp %29 : vector<2x8xf32>
    %cst_19 = arith.constant dense<0.000000e+00> : vector<2xf32>
    %31 = vector.multi_reduction <add>, %30, %cst_19 [1] : vector<2x8xf32> to vector<2xf32>
    %32 = vector.shape_cast %31 : vector<2xf32> to vector<2x1xf32>
    %33 = tpu.reciprocal %32 {approx = true} : vector<2x1xf32> -> vector<2x1xf32>
    %34 = vector.broadcast %33 : vector<2x1xf32> to vector<2x8xf32>
    %35 = arith.mulf %30, %34 : vector<2x8xf32>
    %c0_20 = arith.constant 0 : index
    %c0_21 = arith.constant 0 : index
    %36 = vector.load %arg9[%c0_20, %c0_21] : memref<2x8xf32, #tpu.memory_space<vmem>>, vector<2x8xf32>
    tpu.vector_store %arg9[%c0_20, %c0_21], %35 {strides = array<i32>} : memref<2x8xf32, #tpu.memory_space<vmem>>, vector<2x8xf32>,
    return
  }
  func.func @transform_0(%arg0: i32) -> (i32, i32, i32) {
    %c0_i32 = arith.constant 0 : i32
    %c0_i32_0 = arith.constant 0 : i32
    %c0_i32_1 = arith.constant 0 : i32
    return %arg0, %c0_i32, %c0_i32_0 : i32, i32, i32
  }
  func.func @transform_1(%arg0: i32) -> (i32, i32) {
    %c0_i32 = arith.constant 0 : i32
    %c0_i32_0 = arith.constant 0 : i32
    return %arg0, %c0_i32 : i32, i32
  }
  func.func @transform_2(%arg0: i32) -> (i32, i32) {
    %c0_i32 = arith.constant 0 : i32
    %c0_i32_0 = arith.constant 0 : i32
    %c0_i32_1 = arith.constant 0 : i32
    return %c0_i32, %c0_i32_0 : i32, i32
  }
  func.func @transform_3(%arg0: i32) -> (i32, i32) {
    %c0_i32 = arith.constant 0 : i32
    %c0_i32_0 = arith.constant 0 : i32
    %c0_i32_1 = arith.constant 0 : i32
    return %c0_i32, %c0_i32_0 : i32, i32
  }
  func.func @transform_4(%arg0: i32) -> (i32, i32) {
    %c0_i32 = arith.constant 0 : i32
    %c0_i32_0 = arith.constant 0 : i32
    %c0_i32_1 = arith.constant 0 : i32
    return %c0_i32, %c0_i32_0 : i32, i32
  }
  func.func @transform_5(%arg0: i32) -> (i32, i32) {
    %c0_i32 = arith.constant 0 : i32
    %c0_i32_0 = arith.constant 0 : i32
    %c0_i32_1 = arith.constant 0 : i32
    return %c0_i32, %c0_i32_0 : i32, i32
  }
  func.func @transform_6(%arg0: i32) -> (i32, i32) {
    %c0_i32 = arith.constant 0 : i32
    %c0_i32_0 = arith.constant 0 : i32
    %c0_i32_1 = arith.constant 0 : i32
    return %c0_i32, %c0_i32_0 : i32, i32
  }
  func.func @transform_7(%arg0: i32) -> (i32, i32) {
    %c0_i32 = arith.constant 0 : i32
    %c0_i32_0 = arith.constant 0 : i32
    %c0_i32_1 = arith.constant 0 : i32
    return %c0_i32, %c0_i32_0 : i32, i32
  }
  func.func @transform_8(%arg0: i32) -> (i32, i32) {
    %c0_i32 = arith.constant 0 : i32
    %c0_i32_0 = arith.constant 0 : i32
    return %arg0, %c0_i32 : i32, i32
  }
}

</mosaic_0001>

<bundles_post_ra>
// kernel: tpu_custom_call.1
= control target key start
LH: loop header
LB: loop body
LE: loop exit
PB: predicated region body
PF: predicated region fallthrough
CT: control target
= control target key end

     0   :  { %s483_s0 = inlined_call_operand.hbm [shape: f32[2,8,32], index: 0, kind: input, shape index: {}]   ;;  %s484_s1 = inlined_call_operand.vmem [shape: f32[2,32], index: 1, kind: input, shape index: {}]   ;;  %s485_s2 = inlined_call_operand.hbm [shape: f32[32,32], index: 2, kind: input, shape index: {}]   ;;  %s486_s3 = inlined_call_operand.vmem [shape: f32[1,32], index: 3, kind: input, shape index: {}]   ;;  %s487_s4 = inlined_call_operand.hbm [shape: f32[32,32], index: 4, kind: input, shape index: {}]   ;;  %s488_s5 = inlined_call_operand.vmem [shape: f32[1,32], index: 5, kind: input, shape index: {}]   ;;  %s489_s6 = inlined_call_operand.vmem [shape: f32[1,32], index: 6, kind: input, shape index: {}]   ;;  %s490_s7 = inlined_call_operand.<no memory space> [shape: f32[1,1], index: 7, kind: input, shape index: {}]   ;;  %s491_s8 = inlined_call_operand.hbm [shape: f32[2,8], index: 8, kind: output, shape index: {}]  }
   0x1   :  { %v13_v0 = vstv %s490_s7 }
   0x2   :  { %14 = vst [vmem:[#allocation2] sm:$0x1] %v13_v0 }
   0x3   :  { %15 = vsyncpa [#allocation4], 0 }
   0x4   :  { %16 = vsyncpa [#allocation7], 0 }
   0x5   :  { %17 = vsyncpa [#allocation5], 0  ;;  %s37_s9 = sshll.u32 %s485_s2, 4  ;;  %s393_s10 = smov [#allocation6]   ;;  %s38_s9 = int_to_ptr.hbm [resolvable:$true] %s37_s9 }
   0x6   :  { %s39_s11 = sshll.u32 %s393_s10, 4  ;;  %s22_s14 = sshll.u32 %s483_s0, 4  ;;  %s40_s11 = int_to_ptr.vmem [resolvable:$true] %s39_s11  ;;  %s23_s14 = int_to_ptr.hbm [resolvable:$true] %s22_s14 }
   0x7   :  { %s394_s15 = smov 128   ;;  %s395_s16 = smov 8  }
   0x8   :  { %45 = dma.hbm_to_vmem [thread:$0]  %s38_s9, 512, %s40_s11, [#allocation7], %s394_s15, %s394_s15, %s395_s16  }
   0x9   :  { %s396_s7 = smov [#allocation3]   ;;  %s52_s20 = sshll.u32 %s487_s4, 4  ;;  %s53_s20 = int_to_ptr.hbm [resolvable:$true] %s52_s20 }
   0xa   :  { %s24_s17 = sshll.u32 %s396_s7, 4  ;;  %s397_s2 = smov [#allocation8]   ;;  %s25_s17 = int_to_ptr.vmem [resolvable:$true] %s24_s17 }
   0xb   :  { %30 = dma.hbm_to_vmem [thread:$0]  %s23_s14, 256, %s25_s17, [#allocation4], %s394_s15, %s394_s15, %s395_s16  }
   0xc   :  { %s54_s21 = sshll.u32 %s397_s2, 4  ;;  %s55_s21 = int_to_ptr.vmem [resolvable:$true] %s54_s21 }
   0xd   :  { %60 = dma.hbm_to_vmem [thread:$0]  %s53_s20, 512, %s55_s21, [#allocation7], %s394_s15, %s394_s15, %s395_s16  }
   0xe   :  { %387 = dma.done.wait [#allocation4], 256  }
   0xf   :  { %388 = vsyncadd [#allocation4], 4294967040 }
  0x10   :  { %389 = dma.done.wait [#allocation7], 1024  }
  0x11   :  { %390 = vsyncadd [#allocation7], 4294966272  ;;  %v84_v1 = vld [vmem:[#allocation6 + $0x18] sm:$0xff]  ;;  %v83_v3 = vld [vmem:[#allocation6 + $0x10] sm:$0xff]  ;;  %vm89_vm0 = vcmask 261120   ;;  %v398_v12 = vmov 0   ;;  %v184_v35 = vlaneseq }
  0x12   :  { %v123_v2 = vld [vmem:[#allocation8 + $0x18] sm:$0xff]  ;;  %263 = vmatpush.msra.mxu2 %v84_v1  ;;  %v122_v4 = vld [vmem:[#allocation8 + $0x10] sm:$0xff]  ;;  %108 = vmatpush.msra.mxu0 %v84_v1  ;;  %v82_v5 = vld [vmem:[#allocation6 + $0x8] sm:$0xff]  ;;  %vm188_vm1 = vcmask 1041409   ;;  %vm191_vm2 = vcmask 58368   ;;  %s249_s28 = sshll.u32 %s491_s8, 4  ;;  %s250_s28 = int_to_ptr.hbm [resolvable:$true] %s249_s28 }
  0x13   :  { %143 = vmatpush.msra.mxu1 %v123_v2  ;;  %v121_v6 = vld [vmem:[#allocation8 + $0x8] sm:$0xff]  ;;  %v81_v7 = vld [vmem:[#allocation6] sm:$0xff]  ;;  %v80_v9 = vld [vmem:[#allocation3 + $0x8] sm:$0xff]  ;;  %274 = vset.pattern.permute.xlu1 %v398_v12  ;;  %v185_v37 = vand.u32 127, %v184_v35 }
  0x14   :  { %264 = vmatpush.msra.mxu2 %v83_v3  ;;  %109 = vmatpush.msra.mxu0 %v83_v3  ;;  %v120_v8 = vld [vmem:[#allocation8] sm:$0xff]  ;;  %v119_v10 = vld [vmem:[%s484_s1] sm:$0x3] }
  0x15   :  { %144 = vmatpush.msra.mxu1 %v122_v4  ;;  %v79_v11 = vld [vmem:[#allocation3] sm:$0xff]  ;;  %275 = vset.pattern.permute.xlu2 %v398_v12  ;;  %v280_v13 = vld [vmem:[#allocation2] ss:$0 sm:$0xff] }
  0x16   :  { %265 = vmatpush.msra.mxu2 %v82_v5  ;;  %110 = vmatpush.msra.mxu0 %v82_v5  ;;  %v277_v14 = vld [vmem:[%s488_s5] ss:$0 sm:$0xff] }
  0x17   :  { %145 = vmatpush.msra.mxu1 %v121_v6  ;;  %276 = vset.pattern.permute.xlu0 %v398_v12  ;;  %v278_v15 = vld [vmem:[%s486_s3] ss:$0 sm:$0xff]  ;;  %s399_s3 = smov [#allocation9]  }
  0x18   :  { %266 = vmatpush.msra.mxu2 %v81_v7  ;;  %111 = vmatpush.msra.mxu0 %v81_v7  ;;  %v279_v27 = vld [vmem:[%s489_s6] ss:$0 sm:$0xff]  ;;  %s247_s5 = sshll.u32 %s399_s3, 4  ;;  %s248_s5 = int_to_ptr.vmem [resolvable:$true] %s247_s5 }
  0x19   :  { %146 = vmatpush.msra.mxu1 %v120_v8  ;;  %261 = vmatmul.msk.f32.vlgmr.msra.gmra.mxu2 %vm89_vm0, %v80_v9 }
  0x1a   :  { %262 = vmatmul.msk.f32.vlgmr.msra.gmra.mxu1 %vm89_vm0, %v119_v10  ;;  %260 = vmatmul.msk.f32.vlgmr.msra.gmra.mxu0 %vm89_vm0, %v79_v11 }
  0x1b   :  { %177 = vperm.xlu1 %274, %v280_v13  }
  0x8d   :  { %v178_v36 = vpop.permute.xlu1 %177 }
  0x97   :  { %v148_v16 = vpop.f32.mrf.mxu1  ;;  %v113_v18 = vpop.f32.mrf.mxu0 }
  0x98   :  { %v149_v17 = vadd.f32 %v277_v14, %v148_v16  ;;  %v114_v21 = vadd.f32 %v278_v15, %v113_v18 }
  0x9a   :  { %v152_v19 = vrot.slane %v149_v17, 1  ;;  %v153_v20 = vperm.slane %v149_v17, 0 }
  0x9c   :  { %v157_v22 = vadd.f32 %v153_v20, %v114_v21  ;;  %v116_v23 = vpop.f32.mrf.mxu2  ;;  %v154_v24 = vperm.slane %v152_v19, 0 }
  0x9d   :  { %v117_v25 = vadd.f32 %v278_v15, %v116_v23 }
  0x9e   :  { %281 = vtanh.f32 %v157_v22 }
  0x9f   :  { %v158_v26 = vadd.f32 %v154_v24, %v117_v25 }
  0xa1   :  { %283 = vtanh.f32 %v158_v26 }
  0xa4   :  { %v282_v28 = vpop.eup %281 }
  0xa5   :  { %v165_v29 = vmul.f32 %v282_v28, %v279_v27 }
  0xa7   :  { %v167_v30 = vsel %vm89_vm0, %v165_v29, 0.0  ;;  %v284_v31 = vpop.eup %283 }
  0xa8   :  { %168 = vadd.xlane.f32.xlu0 %v167_v30  ;;  %v166_v32 = vmul.f32 %v284_v31, %v279_v27 }
  0xaa   :  { %v170_v33 = vsel %vm89_vm0, %v166_v32, 0.0 }
  0xb0   :  { %171 = vadd.xlane.f32.xlu0 %v170_v33 }
 0x11b   :  { %v169_v34 = vpop.xlane.xlu0 %168 }
 0x11c   :  { %v180_v38 = vadd.f32 %v178_v36, %v169_v34 }
 0x11e   :  { %v186_v41 = vperm.slane %v180_v38, %v185_v37 }
 0x123   :  { %v172_v39 = vpop.xlane.xlu0 %171 }
 0x124   :  { %v181_v40 = vadd.f32 %v178_v36, %v172_v39 }
 0x126   :  { %v187_v42 = vperm.slane %v181_v40, %v185_v37 }
 0x128   :  { %v189_v43 = vsel %vm188_vm1, %v187_v42, %v186_v41 }
 0x129   :  { %v192_v44 = vsel %vm191_vm2, %v189_v43, -inf }
 0x12a   :  { %193 = vmax.xlane.f32.xlu1 %v192_v44 }
 0x19d   :  { %v194_v45 = vpop.xlane.xlu1 %193 }
 0x19e   :  { %v196_v46 = vperm.slane %v194_v45, 0  ;;  %v197_v47 = vperm.slane %v194_v45, 1 }
 0x1a0   :  { %v200_v48 = vsub.f32 %v180_v38, %v196_v46  ;;  %v201_v50 = vsub.f32 %v181_v40, %v197_v47 }
 0x1a2   :  { %v202_v49 = vmul.f32 1.442695, %v200_v48  ;;  %v204_v51 = vmul.f32 1.442695, %v201_v50 }
 0x1a4   :  { %285 = vpow2.f32 %v202_v49 }
 0x1a5   :  { %287 = vpow2.f32 %v204_v51 }
 0x1aa   :  { %v286_v52 = vpop.eup %285 }
 0x1ab   :  { %209 = vperm.xlu2 %275, %v286_v52   ;;  %v288_v53 = vpop.eup %287 }
 0x1b3   :  { %212 = vperm.xlu2 %275, %v288_v53  }
 0x205   :  { %v210_v54 = vpop.permute.xlu2 %209 }
 0x206   :  { %v214_v56 = vperm.slane %v210_v54, %v185_v37 }
 0x20d   :  { %v213_v55 = vpop.permute.xlu2 %212 }
 0x20e   :  { %v215_v57 = vperm.slane %v213_v55, %v185_v37 }
 0x210   :  { %v216_v58 = vsel %vm188_vm1, %v215_v57, %v214_v56 }
 0x211   :  { %v218_v59 = vsel %vm191_vm2, %v216_v58, 0.0 }
 0x212   :  { %219 = vadd.xlane.f32.xlu0 %v218_v59 }
 0x285   :  { %v220_v60 = vpop.xlane.xlu0 %219 }
 0x286   :  { %289 = vrcp.f32 %v220_v60 }
 0x28c   :  { %v290_v61 = vpop.eup %289 }
 0x28d   :  { %v224_v62 = vperm.slane %v290_v61, 1  ;;  %v223_v63 = vperm.slane %v290_v61, 0 }
 0x28f   :  { %v228_v0 = vmul.f32 %v288_v53, %v224_v62  ;;  %v227_v1 = vmul.f32 %v286_v52, %v223_v63 }
 0x291   :  { %235 = vperm.xlu0 %276, %v228_v0   ;;  %232 = vperm.xlu2 %275, %v227_v1  }
 0x2eb   :  { %v233_v2 = vpop.permute.xlu2 %232 }
 0x2ec   :  { %v237_v4 = vperm.slane %v233_v2, %v185_v37 }
 0x303   :  { %v236_v3 = vpop.permute.xlu0 %235 }
 0x304   :  { %v238_v5 = vperm.slane %v236_v3, %v185_v37 }
 0x306   :  { %v239_v6 = vsel %vm188_vm1, %v238_v5, %v237_v4 }
 0x307   :  { %241 = vst.msk [vmem:[#allocation9] sm:$0x3] %vm191_vm2, %v239_v6 }
 0x308   :  { %252 = dma.vmem_to_hbm [thread:$0]  %s248_s5, 32, %s250_s28, [#allocation5]  }
 0x309   :  { %391 = dma.done.wait [#allocation5], 32  }
 0x30a   :  { %392 = vsyncadd [#allocation5], 4294967264 }
 0x30b   :  { %257 = vsyncpa [#allocation4], 1 }
 0x30c   :  { %258 = vsyncpa [#allocation7], 1 }
 0x30d   :  { %259 = vsyncpa [#allocation5], 1 }

</bundles_post_ra>
